<compile_context>
chip_gen: v6e
topology: v6e:2x2x1
jax: 0.10.0
libtpu: 0.0.40
codegen_flags: <defaults>
</compile_context>

<pallas_src>
import jax
import jax.numpy as jnp
from jax import lax
from jax.experimental import pallas as pl
from jax.experimental.pallas import tpu as pltpu


def _fused_kernel(pi_ref, invalid_ref, value_ref, w_ref, b_ref,
                  pi_out_ref, vt_ref):
    # ---- pi masking (elementwise, memory-bound, tiled over the grid) ----
    pi_out_ref[...] = jnp.where(invalid_ref[...] != 0,
                                jnp.float32(-jnp.inf),
                                pi_ref[...].astype(jnp.float32))

    # ---- value head + transpose(0, 1), computed once per call ----
    @pl.when((pl.program_id(0) == 0) & (pl.program_id(1) == 0))
    def _():
        # w_ref: (1, F), value_ref: (B, F) -> (1, F) x (B, F)^T = (1, B)
        vt = lax.dot_general(
            w_ref[...].astype(jnp.float32),
            value_ref[...].astype(jnp.float32),
            dimension_numbers=(((1,), (1,)), ((), ())),
            preferred_element_type=jnp.float32)
        vt_ref[...] = vt + b_ref[0, 0]


def _pick_tile(dim, cap, quantum):
    """Full dim if it fits the cap, else the largest multiple of `quantum` <= cap."""
    if dim <= cap:
        return dim
    return max(quantum, (cap // quantum) * quantum)


def pi_value_head_forward(pi, value, invalid, w, b):
    """pi: (B, A) logits (any float dtype), value: (B, F), invalid: (B, A) 0/1 mask
       in its native (bool/int8/float) dtype, w: (1, F) nn.Linear(F,1).weight,
       b: (1, 1) nn.Linear(F,1).bias.
       Returns (masked_pi (B, A) f32, v^T (1, B) f32)."""
    B, A = pi.shape
    Bv, F = value.shape
    assert Bv == B, "pi and value must share the batch dimension"
    w = w.reshape(1, F)
    b = b.reshape(1, 1).astype(jnp.float32)

    # Large lane-dense tiles; caps keep double-buffered VMEM use < ~10 MiB
    # (safe on v5e's 16 MiB scoped default and v7x's smaller VMEM).
    tb = _pick_tile(B, 256, 8)     # multiple of 8 (and of 32 -> int8-mask friendly)
    ta = _pick_tile(A, 2048, 128)  # large multiple of 128 -> unmasked full-width vst
    grid = (pl.cdiv(B, tb), pl.cdiv(A, ta))

    pi_out, v_t = pl.pallas_call(
        _fused_kernel,
        out_shape=(jax.ShapeDtypeStruct((B, A), jnp.float32),
                   jax.ShapeDtypeStruct((1, B), jnp.float32)),
        grid_spec=pltpu.PrefetchScalarGridSpec(
            num_scalar_prefetch=0,
            grid=grid,
            in_specs=[
                pl.BlockSpec((tb, ta), lambda i, j: (i, j)),        # pi (native dtype)
                pl.BlockSpec((tb, ta), lambda i, j: (i, j)),        # invalid (native)
                pl.BlockSpec((B, F), lambda i, j: (0, 0)),          # value (resident)
                pl.BlockSpec((1, F), lambda i, j: (0, 0)),          # weight (resident)
                pl.BlockSpec(memory_space=pltpu.MemorySpace.SMEM),  # bias scalar
            ],
            out_specs=[
                pl.BlockSpec((tb, ta), lambda i, j: (i, j)),        # masked pi
                pl.BlockSpec((1, B), lambda i, j: (0, 0)),          # v^T (resident)
            ]),
        # Constant-index (1, B) output is resident across the whole grid, so both
        # axes must be "arbitrary" (a "parallel" axis could race on v7x megacore).
        compiler_params=pltpu.CompilerParams(
            dimension_semantics=("arbitrary", "arbitrary")),
    )(pi, invalid, value, w, b)

    return pi_out, v_t


def ref_forward(pi, value, invalid, w, b):
    """Pure-JAX reference."""
    pi = pi.astype(jnp.float32)
    pi = jnp.where(invalid != 0, -jnp.inf, pi)
    v = value.astype(jnp.float32) @ w.reshape(1, -1).T + b.reshape(1)   # (B, 1)
    return pi, v.T                                                       # (B, A), (1, B)


if __name__ == "__main__":
    B, A, F = 16, 256, 32      # batch, action logits, value features

    key = jax.random.PRNGKey(0)
    k_pi, k_val, k_inv, k_w, k_b = jax.random.split(key, 5)
    pi = jax.random.normal(k_pi, (B, A), jnp.float32)
    value = jax.random.normal(k_val, (B, F), jnp.float32)
    invalid = (jax.random.uniform(k_inv, (B, A)) < 0.25).astype(jnp.int8)  # native narrow mask
    w = 0.1 * jax.random.normal(k_w, (1, F), jnp.float32)   # nn.Linear(F,1).weight
    b = 0.1 * jax.random.normal(k_b, (1, 1), jnp.float32)   # nn.Linear(F,1).bias

    pi_out, v_t = pi_value_head_forward(pi, value, invalid, w, b)
    pi_out, v_t = jax.block_until_ready((pi_out, v_t))

    pi_ref, v_ref = ref_forward(pi, value, invalid, w, b)
    assert pi_out.shape == (B, A) and v_t.shape == (1, B)
    # masked positions must be exactly -inf, valid positions untouched
    assert bool(jnp.all(jnp.isneginf(pi_out) == (invalid != 0)))
    assert jnp.allclose(jnp.where(invalid != 0, 0.0, pi_out),
                        jnp.where(invalid != 0, 0.0, pi_ref)), "pi mismatch"
    assert jnp.allclose(v_t, v_ref, rtol=1e-5, atol=1e-5), (
        f"max abs diff = {jnp.max(jnp.abs(v_t - v_ref))}")

    print("KERNEL_OK")
</pallas_src>

<mosaic_0001>
module attributes {stable_mosaic.version = 11 : i64} {
  func.func @_fused_kernel(%arg0: i32, %arg1: i32, %arg2: memref<16x256xf32, #tpu.memory_space<vmem>>, %arg3: memref<16x256xi8, #tpu.memory_space<vmem>>, %arg4: memref<16x32xf32, #tpu.memory_space<vmem>>, %arg5: memref<1x32xf32, #tpu.memory_space<vmem>>, %arg6: memref<1x1xf32, #tpu.memory_space<smem>>, %arg7: memref<16x256xf32, #tpu.memory_space<vmem>>, %arg8: memref<1x16xf32, #tpu.memory_space<vmem>>) attributes {dimension_semantics = [#tpu.dimension_semantics<arbitrary>, #tpu.dimension_semantics<arbitrary>], iteration_bounds = array<i64: 1, 1>, scalar_prefetch = 0 : i64, scratch_operands = 0 : i64, tpu.core_type = #tpu.core_type<tc>, window_params = [{transform_indices = @transform_0, window_bounds = array<i64: 16, 256>}, {transform_indices = @transform_1, window_bounds = array<i64: 16, 256>}, {pipeline_mode = #tpu.pipeline_mode<synchronous>, transform_indices = @transform_2, window_bounds = array<i64: 16, 32>}, {pipeline_mode = #tpu.pipeline_mode<synchronous>, transform_indices = @transform_3, window_bounds = array<i64: 1, 32>}, {transform_indices = @transform_4, window_bounds = array<i64: 1, 1>}, {transform_indices = @transform_5, window_bounds = array<i64: 16, 256>}, {pipeline_mode = #tpu.pipeline_mode<synchronous>, transform_indices = @transform_6, window_bounds = array<i64: 1, 16>}]} {
    %c0 = arith.constant 0 : index
    %c0_0 = arith.constant 0 : index
    %0 = vector.load %arg3[%c0, %c0_0] : memref<16x256xi8, #tpu.memory_space<vmem>>, vector<16x256xi8>
    %c0_i8 = arith.constant 0 : i8
    %1 = vector.broadcast %c0_i8 : i8 to vector<16x256xi8>
    %2 = arith.cmpi ne, %0, %1 : vector<16x256xi8>
    %c0_1 = arith.constant 0 : index
    %c0_2 = arith.constant 0 : index
    %3 = vector.load %arg2[%c0_1, %c0_2] : memref<16x256xf32, #tpu.memory_space<vmem>>, vector<16x256xf32>
    %cst = arith.constant 0xFF800000 : f32
    %4 = vector.broadcast %cst : f32 to vector<16x256xf32>
    %5 = arith.select %2, %4, %3 : vector<16x256xi1>, vector<16x256xf32>
    %c0_3 = arith.constant 0 : index
    %c0_4 = arith.constant 0 : index
    %6 = vector.load %arg7[%c0_3, %c0_4] : memref<16x256xf32, #tpu.memory_space<vmem>>, vector<16x256xf32>
    tpu.vector_store %arg7[%c0_3, %c0_4], %5 {strides = array<i32>} : memref<16x256xf32, #tpu.memory_space<vmem>>, vector<16x256xf32>,
    %c0_i32 = arith.constant 0 : i32
    %7 = arith.cmpi eq, %arg0, %c0_i32 : i32
    %c0_i32_5 = arith.constant 0 : i32
    %8 = arith.cmpi eq, %arg1, %c0_i32_5 : i32
    %9 = arith.andi %7, %8 : i1
    %10 = arith.extui %9 : i1 to i32
    %c0_i32_6 = arith.constant 0 : i32
    %11 = arith.cmpi ne, %10, %c0_i32_6 : i32
    scf.if %11 {
      %c0_7 = arith.constant 0 : index
      %c0_8 = arith.constant 0 : index
      %12 = vector.load %arg5[%c0_7, %c0_8] : memref<1x32xf32, #tpu.memory_space<vmem>>, vector<1x32xf32>
      %c0_9 = arith.constant 0 : index
      %c0_10 = arith.constant 0 : index
      %13 = vector.load %arg4[%c0_9, %c0_10] : memref<16x32xf32, #tpu.memory_space<vmem>>, vector<16x32xf32>
      %cst_11 = arith.constant dense<0.000000e+00> : vector<1x16xf32>
      %14 = tpu.matmul %12, %13, %cst_11 {dimension_numbers = #tpu.dot_dimension_numbers<[1], [1], [0], [0], [0, 0, 1, 0], [], []>} : vector<1x32xf32>, vector<16x32xf32>, vector<1x16xf32> -> vector<1x16xf32>
      %c0_12 = arith.constant 0 : index
      %c0_13 = arith.constant 0 : index
      %15 = memref.load %arg6[%c0_12, %c0_13] : memref<1x1xf32, #tpu.memory_space<smem>>
      %16 = vector.broadcast %15 : f32 to vector<1x16xf32>
      %17 = arith.addf %14, %16 : vector<1x16xf32>
      %c0_14 = arith.constant 0 : index
      %c0_15 = arith.constant 0 : index
      %18 = vector.load %arg8[%c0_14, %c0_15] : memref<1x16xf32, #tpu.memory_space<vmem>>, vector<1x16xf32>
      tpu.vector_store %arg8[%c0_14, %c0_15], %17 {strides = array<i32>} : memref<1x16xf32, #tpu.memory_space<vmem>>, vector<1x16xf32>,
    } else {
    }
    return
  }
  func.func @transform_0(%arg0: i32, %arg1: i32) -> (i32, i32) {
    %c0_i32 = arith.constant 0 : i32
    return %arg0, %arg1 : i32, i32
  }
  func.func @transform_1(%arg0: i32, %arg1: i32) -> (i32, i32) {
    %c0_i32 = arith.constant 0 : i32
    return %arg0, %arg1 : i32, i32
  }
  func.func @transform_2(%arg0: i32, %arg1: i32) -> (i32, i32) {
    %c0_i32 = arith.constant 0 : i32
    %c0_i32_0 = arith.constant 0 : i32
    %c0_i32_1 = arith.constant 0 : i32
    return %c0_i32, %c0_i32_0 : i32, i32
  }
  func.func @transform_3(%arg0: i32, %arg1: i32) -> (i32, i32) {
    %c0_i32 = arith.constant 0 : i32
    %c0_i32_0 = arith.constant 0 : i32
    %c0_i32_1 = arith.constant 0 : i32
    return %c0_i32, %c0_i32_0 : i32, i32
  }
  func.func @transform_4(%arg0: i32, %arg1: i32) -> (i32, i32) {
    %c0_i32 = arith.constant 0 : i32
    %c0_i32_0 = arith.constant 0 : i32
    %c0_i32_1 = arith.constant 0 : i32
    return %c0_i32, %c0_i32_0 : i32, i32
  }
  func.func @transform_5(%arg0: i32, %arg1: i32) -> (i32, i32) {
    %c0_i32 = arith.constant 0 : i32
    return %arg0, %arg1 : i32, i32
  }
  func.func @transform_6(%arg0: i32, %arg1: i32) -> (i32, i32) {
    %c0_i32 = arith.constant 0 : i32
    %c0_i32_0 = arith.constant 0 : i32
    %c0_i32_1 = arith.constant 0 : i32
    return %c0_i32, %c0_i32_0 : i32, i32
  }
}

</mosaic_0001>

<bundles_post_ra>
// kernel: tpu_custom_call.1
= control target key start
LH: loop header
LB: loop body
LE: loop exit
PB: predicated region body
PF: predicated region fallthrough
CT: control target
= control target key end

     0   :  { %13 = vsyncpa [#allocation4], 0  ;;  %s430_s0 = inlined_call_operand.hbm [shape: f32[16,256], index: 0, kind: input, shape index: {}]   ;;  %s431_s1 = inlined_call_operand.hbm [shape: s8[16,256], index: 1, kind: input, shape index: {}]   ;;  %s432_s2 = inlined_call_operand.hbm [shape: f32[16,32], index: 2, kind: input, shape index: {}]   ;;  %s433_s3 = inlined_call_operand.vmem [shape: f32[1,32], index: 3, kind: input, shape index: {}]   ;;  %s434_s4 = inlined_call_operand.<no memory space> [shape: f32[1,1], index: 4, kind: input, shape index: {}]   ;;  %s435_s5 = inlined_call_operand.hbm [shape: f32[16,256], index: 5, kind: output, shape index: {0}]   ;;  %s436_s6 = inlined_call_operand.hbm [shape: f32[1,16], index: 6, kind: output, shape index: {1}]  }
   0x1   :  { %14 = vsyncpa [#allocation7], 0 }
   0x2   :  { %15 = vsyncpa [#allocation5], 0 }
   0x3   :  { %16 = vsyncpa [#allocation11], 0  ;;  %s354_s21 = smov [#allocation6]  }
   0x4   :  { %s34_s22 = sshll.u32 %s354_s21, 4  ;;  %s35_s22 = int_to_ptr.vmem [resolvable:$true] %s34_s22 }
   0x5   :  { %s254_s23 = scalar_lea.vmem %s35_s22, 128  ;;  %p259_p1 = scmp.lt.s32.totalorder %s35_s22, %s35_s22 }
   0x6   :  { %p255_p0 = scmp.ne.s32.totalorder %s35_s22, %s254_s23  ;;  %p260_p2 = scmp.lt.s32.totalorder %s254_s23, %s254_s23 }
   0x8   :  { %p261_p3 = por %p260_p2, %p259_p1 }
   0xa   :  { %p262_p4 = pnand %p261_p3, %p255_p0 }
   0xc   :  { %265 = shalt.err (!%p262_p4)
}
   0xd   :  { %s355_s24 = smov 64   ;;  %s356_s25 = smov 4  }
   0xe   :  { %40 = dma.hbm_to_vmem [thread:$0]  %s431_s1, 128, %s35_s22, [#allocation7], %s355_s24, %s355_s24, %s356_s25  }
   0xf   :  { %s357_s28 = smov [#allocation3]  }
  0x10   :  { %s22_s29 = sshll.u32 %s357_s28, 4  ;;  %s23_s29 = int_to_ptr.vmem [resolvable:$true] %s22_s29 }
  0x11   :  { %s274_s30 = scalar_lea.vmem %s23_s29, 512  ;;  %p279_p6 = scmp.lt.s32.totalorder %s23_s29, %s23_s29 }
  0x12   :  { %p275_p5 = scmp.ne.s32.totalorder %s23_s29, %s274_s30  ;;  %p280_p7 = scmp.lt.s32.totalorder %s274_s30, %s274_s30 }
  0x14   :  { %p281_p8 = por %p280_p7, %p279_p6 }
  0x16   :  { %p282_p9 = pnand %p281_p8, %p275_p5 }
  0x18   :  { %285 = shalt.err (!%p282_p9)
}
  0x19   :  { %s358_s7 = smov 256   ;;  %s359_s8 = smov 16  }
  0x1a   :  { %28 = dma.hbm_to_vmem [thread:$0]  %s430_s0, 512, %s23_s29, [#allocation4], %s358_s7, %s358_s7, %s359_s8  }
  0x1b   :  { %s360_s1 = smov [#allocation8]  }
  0x1c   :  { %s46_s11 = sshll.u32 %s360_s1, 4  ;;  %s47_s11 = int_to_ptr.vmem [resolvable:$true] %s46_s11 }
  0x1d   :  { %s294_s12 = scalar_lea.vmem %s47_s11, 256  ;;  %p299_p11 = scmp.lt.s32.totalorder %s47_s11, %s47_s11 }
  0x1e   :  { %p295_p10 = scmp.ne.s32.totalorder %s47_s11, %s294_s12  ;;  %p300_p12 = scmp.lt.s32.totalorder %s294_s12, %s294_s12 }
  0x20   :  { %p301_p13 = por %p300_p12, %p299_p11 }
  0x22   :  { %p302_p0 = pnand %p301_p13, %p295_p10 }
  0x24   :  { %305 = shalt.err (!%p302_p0)
}
  0x25   :  { %s361_s13 = smov 128   ;;  %s362_s14 = smov 8  }
  0x26   :  { %52 = dma.hbm_to_vmem [thread:$0]  %s432_s2, 256, %s47_s11, [#allocation7], %s361_s13, %s361_s13, %s362_s14  }
  0x27   :  { %346 = dma.done.wait [#allocation4], 512  }
  0x28   :  { %347 = vsyncadd [#allocation4], 4294966784 }
  0x29   :  { %348 = dma.done.wait [#allocation7], 384  }
  0x2a   :  { %349 = vsyncadd [#allocation7], 4294966912  ;;  %v363_v0 = vmov 0.0   ;;  %vm364_vm0 = vmmov 0   ;;  %vm105_vm1 = vcmask 261120   ;;  %v102_v1 = vld [vmem:[#allocation8 + $0x8] sm:$0xff] }
  0x2b   :  { %225 = vmatprep.subr.mxu0 %v363_v0  ;;  %229 = vmatprep.mubr.msk.f32.mxu0 %vm364_vm0, %v363_v0  ;;  %v101_v2 = vld [vmem:[#allocation8] sm:$0xff]  ;;  %v100_v3 = vld [vmem:[%s433_s3] sm:$0x1]  ;;  %v69_v5 = vld [vmem:[#allocation6 + $0x4] sm:$0xf]  ;;  %v365_v6 = vmov 0  }
  0x2c   :  { %226 = vmatpush3.xpose.msk.msra.mxu0 %vm105_vm1, %v102_v1  ;;  %v68_v4 = vld [vmem:[#allocation6] sm:$0xf]  ;;  %vm71_vm3 = vnez %v69_v5  ;;  %v73_v14 = vld [vmem:[#allocation3 + $0x8] sm:$0xff]  ;;  %v74_v15 = vld [vmem:[#allocation3 + $0x10] sm:$0xff]  ;;  %s366_s2 = smov [#allocation9]  }
  0x2d   :  { %227 = vmatprep.subr.mxu0 %v363_v0  ;;  %vm70_vm2 = vnez %v68_v4  ;;  %v77_v8 = vsel %vm71_vm3, 16843009, %v365_v6  ;;  %v72_v13 = vld [vmem:[#allocation3] sm:$0xff]  ;;  %v75_v16 = vld [vmem:[#allocation3 + $0x18] sm:$0xff]  ;;  %s192_s3 = sshll.u32 %s366_s2, 4  ;;  %s193_s3 = int_to_ptr.vmem [resolvable:$true] %s192_s3 }
  0x2e   :  { %v76_v7 = vsel %vm70_vm2, 16843009, %v365_v6  ;;  %v80_v11 = vunpack.c.0.s8 %v77_v8  ;;  %v81_v12 = vunpack.c.1.s8 %v77_v8  ;;  %s306_s18 = scalar_lea.vmem %s193_s3, 512  ;;  %p311_p2 = scmp.lt.s32.totalorder %s193_s3, %s193_s3 }
  0x2f   :  { %v78_v9 = vunpack.c.0.s8 %v76_v7  ;;  %v79_v10 = vunpack.c.1.s8 %v76_v7  ;;  %p307_p1 = scmp.ne.s32.totalorder %s193_s3, %s306_s18  ;;  %p312_p3 = scmp.lt.s32.totalorder %s306_s18, %s306_s18 }
  0x30   :  { %228 = vmatpush3.xpose.msk.msra.mxu0 %vm105_vm1, %v101_v2  ;;  %vm84_vm6 = vcmp.ne.s32.totalorder %v80_v11, 0  ;;  %vm85_vm7 = vcmp.ne.s32.totalorder %v81_v12, 0 }
  0x31   :  { %vm82_vm4 = vcmp.ne.s32.totalorder %v78_v9, 0  ;;  %vm83_vm5 = vcmp.ne.s32.totalorder %v79_v10, 0  ;;  %v88_v19 = vsel %vm84_vm6, -inf, %v74_v15  ;;  %v89_v20 = vsel %vm85_vm7, -inf, %v75_v16  ;;  %p313_p4 = por %p312_p3, %p311_p2 }
  0x32   :  { %v86_v17 = vsel %vm82_vm4, -inf, %v72_v13  ;;  %v87_v18 = vsel %vm83_vm5, -inf, %v73_v14  ;;  %92 = vst [vmem:[#allocation9 + $0x10] sm:$0xff] %v88_v19  ;;  %93 = vst [vmem:[#allocation9 + $0x18] sm:$0xff] %v89_v20 }
  0x33   :  { %230 = vmatmul.mubr.msk.f32.vlgmr.msra.gmra.mxu0 %vm105_vm1, %v100_v3  ;;  %90 = vst [vmem:[#allocation9] sm:$0xff] %v86_v17  ;;  %91 = vst [vmem:[#allocation9 + $0x8] sm:$0xff] %v87_v18  ;;  %p314_p5 = pnand %p313_p4, %p307_p1 }
  0x35   :  { %317 = shalt.err (!%p314_p5)
}
  0x36   :  { %198 = dma.vmem_to_hbm [thread:$0]  %s193_s3, 512, %s435_s5, [#allocation5], %s358_s7, %s358_s7, %s359_s8   ;;  %vm185_vm8 = vcmask 122880  }
  0x37   :  { %v104_v21 = vstv %s434_s4  ;;  %s367_s23 = smov [#allocation10]  }
  0x38   :  { %s205_s24 = sshll.u32 %s367_s23, 4  ;;  %s206_s24 = int_to_ptr.vmem [resolvable:$true] %s205_s24 }
  0x39   :  { %s326_s25 = scalar_lea.vmem %s206_s24, 16  ;;  %s330_s26 = scalar_lea.vmem %s206_s24, 32 }
  0x3a   :  { %p327_p6 = scmp.ne.s32.totalorder %s206_s24, %s326_s25  ;;  %p331_p7 = scmp.lt.s32.totalorder %s206_s24, %s206_s24 }
  0x3b   :  { %p332_p8 = scmp.lt.s32.totalorder %s330_s26, %s326_s25 }
  0x3d   :  { %p333_p9 = por %p332_p8, %p331_p7 }
  0x3f   :  { %p334_p10 = pnand %p333_p9, %p327_p6 }
  0xf3   :  { %v181_v22 = vpop.f32.mrf.mxu0 }
  0xf4   :  { %v182_v23 = vadd.f32 %v181_v22, %v104_v21 }
  0xf5   :  { %v231_v24 = vpop.f32.mrf.mxu0 }
  0xf6   :  { %186 = vst.msk [vmem:[#allocation10] sm:$0x1] %vm185_vm8, %v182_v23 }
  0xf7   :  { %337 = shalt.err (!%p334_p10)
}
  0xf8   :  { %208 = dma.vmem_to_hbm [thread:$0]  %s206_s24, 16, %s436_s6, [#allocation11]  }
  0xf9   :  { %350 = dma.done.wait [#allocation5], 512  }
  0xfa   :  { %351 = vsyncadd [#allocation5], 4294966784 }
  0xfb   :  { %352 = dma.done.wait [#allocation11], 16  }
  0xfc   :  { %353 = vsyncadd [#allocation11], 4294967280 }
  0xfd   :  { %215 = vsyncpa [#allocation4], 1 }
  0xfe   :  { %216 = vsyncpa [#allocation7], 1 }
  0xff   :  { %217 = vsyncpa [#allocation5], 1 }
 0x100   :  { %218 = vsyncpa [#allocation11], 1 }

</bundles_post_ra>
